<compile_context>
chip_gen: v6e
topology: v6e:2x2x1
jax: 0.10.0
libtpu: 0.0.40
codegen_flags: <defaults>
</compile_context>

<pallas_src>
import functools

import jax
import jax.numpy as jnp
from jax.experimental import pallas as pl
from jax.experimental.pallas import tpu as pltpu


# --------------------------------------------------------------------------- #
# Helpers
# --------------------------------------------------------------------------- #
def _round_up(v, m):
    return (v + m - 1) // m * m


def _largest_aligned_divisor(padded, align, cap):
    """Largest multiple of `align` that divides `padded` and is <= cap."""
    c = min(cap, padded)
    c -= c % align
    while c > align:
        if padded % c == 0:
            return c
        c -= align
    return align


def _hw_plan():
    """Generation-aware VMEM budget / limit and tile caps."""
    try:
        cap = int(getattr(pltpu.get_tpu_info(), "vmem_capacity_bytes"))
    except Exception:
        cap = None
    if cap is None:
        # Unknown part: use the conservative values that are known to compile.
        return dict(budget=32 << 20, vmem_limit=48 << 20,
                    tm_cap=512, tk_cap=512, tn_cap=512)
    if cap <= 64 * 1024 * 1024:
        # v7x: 64 MiB / TensorCore -> leave headroom for compiler scratch.
        return dict(budget=28 << 20, vmem_limit=40 << 20,
                    tm_cap=512, tk_cap=512, tn_cap=512)
    # v5e / v6e: 128 MiB VMEM -> bigger tiles, more ensemble members per step.
    return dict(budget=64 << 20, vmem_limit=96 << 20,
                tm_cap=1024, tk_cap=1024, tn_cap=1024)


# --------------------------------------------------------------------------- #
# Kernels
# --------------------------------------------------------------------------- #
def _ensemble_linear_kernel_1k(x_ref, w_ref, b_ref, o_ref):
    """Single reduction step (Kp == tk): no accumulator scratch, direct store.

    x_ref: (eb, tm, tk)   w_ref: (eb, tk, tn)   b_ref: (eb, 1, tn) f32
    o_ref: (eb, tm, tn)
    """
    eb = x_ref.shape[0]
    for e in range(eb):  # static unroll: each MXU result is consumed immediately
        acc = jnp.dot(x_ref[e], w_ref[e], preferred_element_type=jnp.float32)
        o_ref[e] = (acc + b_ref[e]).astype(o_ref.dtype)


def _ensemble_linear_kernel_nk(x_ref, w_ref, b_ref, o_ref, acc_ref):
    """Multi-step reduction over the last grid axis (k)."""
    k = pl.program_id(3)
    eb = x_ref.shape[0]

    def step(first):
        for e in range(eb):
            d = jnp.dot(x_ref[e], w_ref[e], preferred_element_type=jnp.float32)
            if first:
                acc_ref[e] = d            # store on k==0: no zero-init pass
            else:
                acc_ref[e] += d

    @pl.when(k == 0)
    def _():
        step(True)

    @pl.when(k > 0)
    def _():
        step(False)

    @pl.when(k == pl.num_programs(3) - 1)
    def _():
        for e in range(eb):
            o_ref[e] = (acc_ref[e] + b_ref[e]).astype(o_ref.dtype)


# --------------------------------------------------------------------------- #
# Planning / parameter preparation / forward
# --------------------------------------------------------------------------- #
def make_plan(E, B, Din, Dout, *, compute_dtype=jnp.float32,
              out_dtype=jnp.float32):
    """Static tiling decisions (call once per layer/shape)."""
    hw = _hw_plan()
    in_bytes = jnp.dtype(compute_dtype).itemsize
    out_bytes = jnp.dtype(out_dtype).itemsize

    # Pad only to hardware tiling needs (128 lanes; 8/16 sublanes), NOT to the
    # tile cap, so e.g. Dout=640 pads to 640 instead of 1024.
    row_align = 16 if in_bytes < 4 else 8
    Bp = _round_up(B, row_align)
    Kp = _round_up(Din, 128)
    Np = _round_up(Dout, 128)

    tk = _largest_aligned_divisor(Kp, 128, hw["tk_cap"])
    tn = _largest_aligned_divisor(Np, 128, hw["tn_cap"])
    # Prefer a single i-tile: W's index_map is independent of i, so every extra
    # i-tile re-streams the whole weight tensor from HBM.
    tm = Bp if Bp <= hw["tm_cap"] else _largest_aligned_divisor(Bp, row_align,
                                                                hw["tm_cap"])
    multi_k = Kp > tk

    # Ensemble members per grid step: fill the VMEM budget.  Double-buffered
    # x / W / bias / out tiles; bias counts its (·,8,·) sublane padding; plus
    # the f32 accumulator when the reduction has multiple steps.
    per_member = 2 * (tm * tk * in_bytes + tk * tn * in_bytes
                      + 8 * tn * 4 + tm * tn * out_bytes)
    if multi_k:
        per_member += tm * tn * 4
    eb = max(1, min(E, hw["budget"] // per_member))

    # Keep >= 2 parallel grid steps so the second TensorCore (v7x) has work.
    if (Bp // tm) * (Np // tn) == 1 and E >= 2:
        eb = min(eb, -(-E // 2))

    Ep = _round_up(E, eb)   # eb need not divide E: pad with zero members.

    return dict(E=E, B=B, Din=Din, Dout=Dout,
                Ep=Ep, Bp=Bp, Kp=Kp, Np=Np,
                eb=eb, tm=tm, tk=tk, tn=tn, multi_k=multi_k,
                compute_dtype=compute_dtype, out_dtype=out_dtype,
                vmem_limit=hw["vmem_limit"])


def prepare_params(W, b, plan):
    """Pad + cast the parameters ONCE (at init / after each parameter update)
    so the per-call path never re-reads W in f32."""
    E, Din, Dout = plan["E"], plan["Din"], plan["Dout"]
    Ep, Kp, Np = plan["Ep"], plan["Kp"], plan["Np"]
    Wp = jnp.pad(W, ((0, Ep - E), (0, Kp - Din), (0, Np - Dout))
                 ).astype(plan["compute_dtype"])
    bp = jnp.pad(b, ((0, Ep - E), (0, 0), (0, Np - Dout))).astype(jnp.float32)
    return Wp, bp


def ensemble_linear(x, Wp, bp, *, plan):
    """out[e] = x[e] @ W[e] + b[e]  with pre-prepared (padded, cast) params."""
    E, B, Din, Dout = plan["E"], plan["B"], plan["Din"], plan["Dout"]
    Ep, Bp, Kp, Np = plan["Ep"], plan["Bp"], plan["Kp"], plan["Np"]
    eb, tm, tk, tn = plan["eb"], plan["tm"], plan["tk"], plan["tn"]

    # x is the cheap operand: pad + cast it per call.
    xs = jnp.pad(x, ((0, Ep - E), (0, Bp - B), (0, Kp - Din))
                 ).astype(plan["compute_dtype"])

    if plan["multi_k"]:
        grid = (Ep // eb, Bp // tm, Np // tn, Kp // tk)
        out = pl.pallas_call(
            _ensemble_linear_kernel_nk,
            out_shape=jax.ShapeDtypeStruct((Ep, Bp, Np), plan["out_dtype"]),
            grid=grid,
            in_specs=[
                pl.BlockSpec((eb, tm, tk), lambda e, i, j, k: (e, i, k)),
                pl.BlockSpec((eb, tk, tn), lambda e, i, j, k: (e, k, j)),
                pl.BlockSpec((eb, 1, tn), lambda e, i, j, k: (e, 0, j)),
            ],
            out_specs=pl.BlockSpec((eb, tm, tn), lambda e, i, j, k: (e, i, j)),
            scratch_shapes=[pltpu.VMEM((eb, tm, tn), jnp.float32)],
            compiler_params=pltpu.CompilerParams(
                dimension_semantics=("parallel", "parallel", "parallel",
                                     "arbitrary"),
                vmem_limit_bytes=plan["vmem_limit"]),
        )(xs, Wp, bp)
    else:
        grid = (Ep // eb, Bp // tm, Np // tn)
        out = pl.pallas_call(
            _ensemble_linear_kernel_1k,
            out_shape=jax.ShapeDtypeStruct((Ep, Bp, Np), plan["out_dtype"]),
            grid=grid,
            in_specs=[
                pl.BlockSpec((eb, tm, tk), lambda e, i, j: (e, i, 0)),
                pl.BlockSpec((eb, tk, tn), lambda e, i, j: (e, 0, j)),
                pl.BlockSpec((eb, 1, tn), lambda e, i, j: (e, 0, j)),
            ],
            out_specs=pl.BlockSpec((eb, tm, tn), lambda e, i, j: (e, i, j)),
            compiler_params=pltpu.CompilerParams(
                dimension_semantics=("parallel", "parallel", "parallel"),
                vmem_limit_bytes=plan["vmem_limit"]),
        )(xs, Wp, bp)

    return out[:E, :B, :Dout]


def parallelized_layer_mlp(x, W, b, *, compute_dtype=jnp.float32):
    """One-shot convenience wrapper (pads/casts W per call).  For repeated
    forwards, build the plan once and cache prepare_params(W, b, plan).
    compute_dtype=jnp.bfloat16 is an explicit opt-in fast path (bf16 MXU
    inputs, f32 accumulation) — it rounds x/W relative to the f32 reference."""
    E, B, Din = x.shape
    Dout = W.shape[-1]
    plan = make_plan(E, B, Din, Dout, compute_dtype=compute_dtype,
                     out_dtype=x.dtype)
    Wp, bp = prepare_params(W, b, plan)
    return ensemble_linear(x, Wp, bp, plan=plan)


def init_params(key, ensemble_size, input_dim, output_dim,
                w_std_value=1.0, b_init_value=0.0):
    # Mirrors: W = fmod(randn(E, Din, Dout), 2) * w_std ; b = zeros(E,1,Dout)+b_init
    w_init = jax.random.normal(key, (ensemble_size, input_dim, output_dim),
                               dtype=jnp.float32)
    W = jnp.fmod(w_init, 2.0) * w_std_value
    b = jnp.zeros((ensemble_size, 1, output_dim), dtype=jnp.float32) + b_init_value
    return W, b


# --------------------------------------------------------------------------- #
# Demo / correctness check
# --------------------------------------------------------------------------- #
if __name__ == "__main__":
    key = jax.random.PRNGKey(0)
    k_w, k_x = jax.random.split(key)

    ensemble_size, batch, input_dim, output_dim = 4, 8, 32, 16

    W, b = init_params(k_w, ensemble_size, input_dim, output_dim,
                       w_std_value=1.0, b_init_value=0.0)
    x = jax.random.normal(k_x, (ensemble_size, batch, input_dim),
                          dtype=jnp.float32)

    # Exact f32 path: plan built once, params prepared once, forward jitted.
    plan_f32 = make_plan(ensemble_size, batch, input_dim, output_dim,
                         compute_dtype=jnp.float32, out_dtype=jnp.float32)
    Wp32, bp32 = prepare_params(W, b, plan_f32)
    fwd_f32 = jax.jit(functools.partial(ensemble_linear, plan=plan_f32))
    out_f32 = fwd_f32(x, Wp32, bp32)

    # Explicit opt-in bf16 fast path (halves W HBM traffic, f32 accumulation).
    plan_bf16 = make_plan(ensemble_size, batch, input_dim, output_dim,
                          compute_dtype=jnp.bfloat16, out_dtype=jnp.float32)
    Wp16, bp16 = prepare_params(W, b, plan_bf16)
    fwd_bf16 = jax.jit(functools.partial(ensemble_linear, plan=plan_bf16))
    out_bf16 = fwd_bf16(x, Wp16, bp16)

    jax.block_until_ready((out_f32, out_bf16))

    ref = jnp.einsum("ebi,eio->ebo", x, W) + b
    assert out_f32.shape == (ensemble_size, batch, output_dim)
    assert out_bf16.shape == (ensemble_size, batch, output_dim)
    assert jnp.allclose(out_f32, ref, atol=1e-4, rtol=1e-4)
    # bf16 input rounding -> looser tolerance.
    assert jnp.allclose(out_bf16, ref, atol=1.5e-1, rtol=5e-2)

    print("KERNEL_OK")
</pallas_src>

<mosaic_0001>
module attributes {stable_mosaic.version = 11 : i64} {
  func.func @_ensemble_linear_kernel_1k(%arg0: i32, %arg1: i32, %arg2: i32, %arg3: memref<2x8x128xf32, #tpu.memory_space<vmem>>, %arg4: memref<2x128x128xf32, #tpu.memory_space<vmem>>, %arg5: memref<2x1x128xf32, #tpu.memory_space<vmem>>, %arg6: memref<2x8x128xf32, #tpu.memory_space<vmem>>) attributes {dimension_semantics = [#tpu.dimension_semantics<parallel>, #tpu.dimension_semantics<parallel>, #tpu.dimension_semantics<parallel>], iteration_bounds = array<i64: 2, 1, 1>, scalar_prefetch = 0 : i64, scratch_operands = 0 : i64, tpu.core_type = #tpu.core_type<tc>, window_params = [{transform_indices = @transform_0, window_bounds = array<i64: 2, 8, 128>}, {transform_indices = @transform_1, window_bounds = array<i64: 2, 128, 128>}, {transform_indices = @transform_2, window_bounds = array<i64: 2, 1, 128>}, {transform_indices = @transform_3, window_bounds = array<i64: 2, 8, 128>}]} {
    %c0 = arith.constant 0 : index
    %c0_0 = arith.constant 0 : index
    %c0_1 = arith.constant 0 : index
    %0 = vector.load %arg3[%c0, %c0_0, %c0_1] : memref<2x8x128xf32, #tpu.memory_space<vmem>>, vector<1x8x128xf32>
    %1 = vector.shape_cast %0 : vector<1x8x128xf32> to vector<8x128xf32>
    %c0_2 = arith.constant 0 : index
    %c0_3 = arith.constant 0 : index
    %c0_4 = arith.constant 0 : index
    %2 = vector.load %arg4[%c0_2, %c0_3, %c0_4] : memref<2x128x128xf32, #tpu.memory_space<vmem>>, vector<1x128x128xf32>
    %3 = vector.shape_cast %2 : vector<1x128x128xf32> to vector<128x128xf32>
    %cst = arith.constant dense<0.000000e+00> : vector<8x128xf32>
    %4 = tpu.matmul %1, %3, %cst {dimension_numbers = #tpu.dot_dimension_numbers<[1], [0], [0], [1], [0, 0, 1, 1], [], []>} : vector<8x128xf32>, vector<128x128xf32>, vector<8x128xf32> -> vector<8x128xf32>
    %c0_5 = arith.constant 0 : index
    %c0_6 = arith.constant 0 : index
    %c0_7 = arith.constant 0 : index
    %5 = vector.load %arg5[%c0_5, %c0_6, %c0_7] : memref<2x1x128xf32, #tpu.memory_space<vmem>>, vector<1x1x128xf32>
    %6 = vector.shape_cast %5 : vector<1x1x128xf32> to vector<1x128xf32>
    %7 = vector.broadcast %6 : vector<1x128xf32> to vector<8x128xf32>
    %8 = arith.addf %4, %7 : vector<8x128xf32>
    %c0_8 = arith.constant 0 : index
    %c0_9 = arith.constant 0 : index
    %c0_10 = arith.constant 0 : index
    %9 = vector.load %arg6[%c0_8, %c0_9, %c0_10] : memref<2x8x128xf32, #tpu.memory_space<vmem>>, vector<1x8x128xf32>
    %10 = vector.shape_cast %9 : vector<1x8x128xf32> to vector<8x128xf32>
    %11 = vector.shape_cast %8 : vector<8x128xf32> to vector<1x8x128xf32>
    tpu.vector_store %arg6[%c0_8, %c0_9, %c0_10], %11 {strides = array<i32>} : memref<2x8x128xf32, #tpu.memory_space<vmem>>, vector<1x8x128xf32>,
    %c1 = arith.constant 1 : index
    %c0_11 = arith.constant 0 : index
    %c0_12 = arith.constant 0 : index
    %12 = vector.load %arg3[%c1, %c0_11, %c0_12] : memref<2x8x128xf32, #tpu.memory_space<vmem>>, vector<1x8x128xf32>
    %13 = vector.shape_cast %12 : vector<1x8x128xf32> to vector<8x128xf32>
    %c1_13 = arith.constant 1 : index
    %c0_14 = arith.constant 0 : index
    %c0_15 = arith.constant 0 : index
    %14 = vector.load %arg4[%c1_13, %c0_14, %c0_15] : memref<2x128x128xf32, #tpu.memory_space<vmem>>, vector<1x128x128xf32>
    %15 = vector.shape_cast %14 : vector<1x128x128xf32> to vector<128x128xf32>
    %cst_16 = arith.constant dense<0.000000e+00> : vector<8x128xf32>
    %16 = tpu.matmul %13, %15, %cst_16 {dimension_numbers = #tpu.dot_dimension_numbers<[1], [0], [0], [1], [0, 0, 1, 1], [], []>} : vector<8x128xf32>, vector<128x128xf32>, vector<8x128xf32> -> vector<8x128xf32>
    %c1_17 = arith.constant 1 : index
    %c0_18 = arith.constant 0 : index
    %c0_19 = arith.constant 0 : index
    %17 = vector.load %arg5[%c1_17, %c0_18, %c0_19] : memref<2x1x128xf32, #tpu.memory_space<vmem>>, vector<1x1x128xf32>
    %18 = vector.shape_cast %17 : vector<1x1x128xf32> to vector<1x128xf32>
    %19 = vector.broadcast %18 : vector<1x128xf32> to vector<8x128xf32>
    %20 = arith.addf %16, %19 : vector<8x128xf32>
    %c1_20 = arith.constant 1 : index
    %c0_21 = arith.constant 0 : index
    %c0_22 = arith.constant 0 : index
    %21 = vector.load %arg6[%c1_20, %c0_21, %c0_22] : memref<2x8x128xf32, #tpu.memory_space<vmem>>, vector<1x8x128xf32>
    %22 = vector.shape_cast %21 : vector<1x8x128xf32> to vector<8x128xf32>
    %23 = vector.shape_cast %20 : vector<8x128xf32> to vector<1x8x128xf32>
    tpu.vector_store %arg6[%c1_20, %c0_21, %c0_22], %23 {strides = array<i32>} : memref<2x8x128xf32, #tpu.memory_space<vmem>>, vector<1x8x128xf32>,
    return
  }
  func.func @transform_0(%arg0: i32, %arg1: i32, %arg2: i32) -> (i32, i32, i32) {
    %c0_i32 = arith.constant 0 : i32
    %c0_i32_0 = arith.constant 0 : i32
    return %arg0, %arg1, %c0_i32 : i32, i32, i32
  }
  func.func @transform_1(%arg0: i32, %arg1: i32, %arg2: i32) -> (i32, i32, i32) {
    %c0_i32 = arith.constant 0 : i32
    %c0_i32_0 = arith.constant 0 : i32
    return %arg0, %c0_i32, %arg2 : i32, i32, i32
  }
  func.func @transform_2(%arg0: i32, %arg1: i32, %arg2: i32) -> (i32, i32, i32) {
    %c0_i32 = arith.constant 0 : i32
    %c0_i32_0 = arith.constant 0 : i32
    return %arg0, %c0_i32, %arg2 : i32, i32, i32
  }
  func.func @transform_3(%arg0: i32, %arg1: i32, %arg2: i32) -> (i32, i32, i32) {
    %c0_i32 = arith.constant 0 : i32
    return %arg0, %arg1, %arg2 : i32, i32, i32
  }
}

</mosaic_0001>

<bundles_post_ra>
// kernel: ensemble_linear.1
= control target key start
LH: loop header
LB: loop body
LE: loop exit
PB: predicated region body
PF: predicated region fallthrough
CT: control target
= control target key end

     0   :  { %8 = vsyncpa [#allocation3], 0  ;;  %s1186_s0 = inlined_call_operand.vmem [shape: f32[4,8,128], index: 0, kind: input, shape index: {}]   ;;  %s1187_s1 = inlined_call_operand.hbm [shape: f32[4,128,128], index: 1, kind: input, shape index: {}]   ;;  %s1188_s2 = inlined_call_operand.vmem [shape: f32[4,1,128], index: 2, kind: input, shape index: {}]   ;;  %s1189_s3 = inlined_call_operand.hbm [shape: f32[4,8,128], index: 3, kind: output, shape index: {}]  }
   0x1   :  { %10 = vsyncpa [#allocation3 + $0x1], 0 }
   0x2   :  { %11 = vsyncpa [#allocation4], 0 }
   0x3   :  { %13 = vsyncpa [#allocation4 + $0x1], 0  ;;  %s960_s12 = smov 0   ;;  %s962_s13 = smov 0  }
   0x4   :  { %s964_s14 = smov 0   ;;  %s966_s15 = smov 0  }
   0x5   :  { %s968_s16 = smov 0   ;;  %s970_s17 = smov 0  }
   0x6 LB: > { %s607_s18 = sadd.s32 4294967295, %s930_s17   ;;  %s608_s19 = sadd.s32 4294967294, %s930_s17   ;;  %s930_s17 = sphi %s970_s17, %s19_s17   ;;  %s926_s16 = sphi %s968_s16, %s1200_s16   ;;  %s922_s15 = sphi %s966_s15, %s1199_s15   ;;  %s918_s14 = sphi %s964_s14, %s1198_s14   ;;  %s914_s13 = sphi %s962_s13, %s1197_s13   ;;  %s910_s12 = sphi %s960_s12, %s1196_s12  }
   0x7   : > { %s38_s20 = sadd.s32 1, %s926_s16  ;;  %s75_s21 = sadd.s32 1, %s918_s14 }
   0x8   : > { %p40_p0 = scmp.ge.s32.totalorder %s38_s20, 2  ;;  %p82_p1 = scmp.ne.s32.totalorder %s918_s14, %s914_s13 }
   0x9   : > { %p83_p2 = scmp.eq.s32.totalorder %s930_s17, 0  ;;  %p88_p3 = scmp.ne.s32.totalorder %s914_s13, %s910_s12 }
   0xa   : > { %s1202_s20 = smov (%p40_p0, %s38_s20), 0  ;;  %p89_p5 = scmp.eq.s32.totalorder %s607_s18, 0 }
   0xb   : > { %p1001_p4 = por %p83_p2, %p82_p1  ;;  %s70_s23 = ssub.s32 %s926_s16, %s1202_s20 }
   0xc   : > { %p144_p6 = scmp.eq.s32.totalorder %s607_s18, 1  ;;  %p73_p7 = scmp.eq.s32.totalorder %s70_s23, 0 }
   0xd   : > { %p1007_p8 = por %p89_p5, %p88_p3  ;;  %p150_p10 = scmp.eq.s32.totalorder %s608_s19, 1 }
   0xe   : > { %p1011_p9 = por %p144_p6, %p82_p1  ;;  %p766_p13 = scmp.lt.s32.totalorder %s930_s17, 2 }
   0xf   : > { %s1016_s26 = scalar_select %p73_p7, %s918_s14, %s75_s21  }
  0x10   : > { %p1018_p11 = por %p150_p10, %p88_p3  ;;  %s182_s28 = sand.u32 1, %s918_s14  }
  0x11   : > { %s611_s29 = sshll.u32 %s182_s28, 8  ;;  %s648_s30 = sshll.u32 %s926_s16, 12 }
  0x12   : > { %s194_s6 = scalar_lea.hbm %s1187_s1, %s648_s30  ;;  %s186_s7 = scalar_lea.vmem [#allocation2], %s611_s29 }
  0x13   : > { %s195_s8 = sshll.u32 %s186_s7, 4  ;;  %p1031_p0 = pnand %p766_p13, %p1001_p4  ;;  %s196_s8 = int_to_ptr.vmem [resolvable:$true] %s195_s8 }
  0x14   : > { %p615_p1 = scmp.ge.s32.totalorder %s930_s17, 1  ;;  %s183_s10 = scalar_lea.sflag [#allocation3], %s182_s28 }
  0x15   : > { %p824_p2 = pneg %p1031_p0  ;;  %s835_s11 = scalar_lea.vmem %s196_s8, 4096 }
  0x16   : > { %p836_p3 = scmp.ne.s32.totalorder %s196_s8, %s835_s11  ;;  %s932_s18 = smov [#allocation2]  }
  0x17   : > { %s840_s19 = sshll.u32 %s932_s18, 4  ;;  %s841_s19 = int_to_ptr.vmem [resolvable:$false] %s840_s19 }
  0x18   : > { %p838_p5 = pnand %p836_p3, %p824_p2  ;;  %s842_s21 = scalar_lea.vmem %s841_s19, 8192 }
  0x19   : > { %p843_p7 = scmp.lt.s32.totalorder %s196_s8, %s841_s19  ;;  %p844_p10 = scmp.lt.s32.totalorder %s842_s21, %s835_s11 }
  0x1a   : > { %p839_p6 = pneg %p838_p5 }
  0x1b   : > { %p845_p12 = por %p844_p10, %p843_p7 }
  0x1d   : > { %p846_p4 = pnand %p845_p12, %p839_p6 }
  0x1f   : > { %849 = shalt.err (!%p846_p4)
}
  0x20   : > { %s933_s22 = smov 128   ;;  %s934_s23 = smov 8  }
  0x21   : > { %761 = dma.hbm_to_vmem [thread:$0]  (!%p1031_p0), %s194_s6, 4096, %s196_s8, %s183_s10, %s933_s22, %s933_s22, %s934_s23  }
  0x22   : > { %p214_p13 = scmp.lt.s32.totalorder %s930_s17, 3 }
  0x24   : > { %p215_p2 = pnand %p615_p1, %p214_p13 }
  0x25   : > { %s1044_s28 = sand.u32 (!%p215_p2), 1, %s914_s13  }
  0x26   : > { %218 = sbr.rel (%p215_p2) target bundleno = 287 (0x11f), region = 32  ;;  %s616_s29 = sshll.u32 (!%p215_p2), %s1044_s28, 8 }
  0x27   : > { %s221_s30 = scalar_lea.sflag (!%p215_p2), [#allocation3], %s1044_s28  ;;  %s1048_s4 = scalar_lea.vmem (!%p215_p2), [#allocation2], %s616_s29 }
  0x2b   : > { %901 = dma.done.wait (%p1007_p8), %s221_s30, 4096  }
  0x2c   : > { %903 = vsyncadd (%p1007_p8), %s221_s30, 4294963200  ;;  %v935_v0 = vmov 0.0   ;;  %vm936_vm0 = vmmov 0   ;;  %v297_v1 = vld [vmem:[%s1048_s4 + $0x78] sm:$0xff]  ;;  %v296_v3 = vld [vmem:[%s1048_s4 + $0x70] sm:$0xff]  ;;  %s618_s24 = sshll.u32 %s922_s15, 1 }
  0x2d   : > { %684 = vmatprep.subr.mxu0 %v935_v0  ;;  %719 = vmatprep.subr.mxu1 %v935_v0  ;;  %v638_v2 = vld [vmem:[%s1048_s4 + $0xf8] sm:$0xff]  ;;  %v637_v4 = vld [vmem:[%s1048_s4 + $0xf0] sm:$0xff]  ;;  %v295_v5 = vld [vmem:[%s1048_s4 + $0x68] sm:$0xff]  ;;  %p263_p8 = scmp.lt.s32.totalorder %s618_s24, 3  ;;  %s617_s9 = sshll.u32 %s1044_s28, 4 }
  0x2e   : > { %716 = vmatprep.mubr.msk.f32.mxu0 %vm936_vm0, %v935_v0  ;;  %751 = vmatprep.mubr.msk.f32.mxu1 %vm936_vm0, %v935_v0  ;;  %v636_v6 = vld [vmem:[%s1048_s4 + $0xe8] sm:$0xff]  ;;  %v294_v7 = vld [vmem:[%s1048_s4 + $0x60] sm:$0xff]  ;;  %v293_v9 = vld [vmem:[%s1048_s4 + $0x58] sm:$0xff]  ;;  %s261_s19 = scalar_lea.vmem [#allocation5], %s617_s9  ;;  %s649_s22 = sshll.u32 %s922_s15, 8 }
  0x2f   : > { %685 = vmatpush3.msra.mxu0 %v297_v1  ;;  %720 = vmatpush3.msra.mxu1 %v638_v2  ;;  %v635_v8 = vld [vmem:[%s1048_s4 + $0xe0] sm:$0xff]  ;;  %v634_v10 = vld [vmem:[%s1048_s4 + $0xd8] sm:$0xff]  ;;  %v292_v11 = vld [vmem:[%s1048_s4 + $0x50] sm:$0xff]  ;;  %s1204_s24 = smov (!%p263_p8, %s618_s24), 3  ;;  %s491_s21 = sshll.u32 %s261_s19, 4  ;;  %s1133_s21 = int_to_ptr.vmem [resolvable:$true] %s491_s21 }
  0x30   : > { %686 = vmatprep.subr.mxu0 %v935_v0  ;;  %721 = vmatprep.subr.mxu1 %v935_v0  ;;  %v633_v12 = vld [vmem:[%s1048_s4 + $0xd0] sm:$0xff]  ;;  %v291_v13 = vld [vmem:[%s1048_s4 + $0x48] sm:$0xff]  ;;  %v290_v15 = vld [vmem:[%s1048_s4 + $0x40] sm:$0xff]  ;;  %s619_s5 = sshll.u32 %s1204_s24, 3  ;;  %s278_s18 = scalar_lea.vmem %s1188_s2, %s1204_s24 }
  0x31   : > { %687 = vmatpush3.msra.mxu0 %v296_v3  ;;  %722 = vmatpush3.msra.mxu1 %v637_v4  ;;  %v632_v14 = vld [vmem:[%s1048_s4 + $0xc8] sm:$0xff]  ;;  %v631_v16 = vld [vmem:[%s1048_s4 + $0xc0] sm:$0xff]  ;;  %v289_v17 = vld [vmem:[%s1048_s4 + $0x38] sm:$0xff]  ;;  %s269_s8 = scalar_lea.vmem %s1186_s0, %s619_s5  ;;  %s1138_s30 = scalar_lea.hbm %s1189_s3, %s649_s22 }
  0x32   : > { %688 = vmatprep.subr.mxu0 %v935_v0  ;;  %723 = vmatprep.subr.mxu1 %v935_v0  ;;  %v630_v18 = vld [vmem:[%s1048_s4 + $0xb8] sm:$0xff]  ;;  %v288_v19 = vld [vmem:[%s1048_s4 + $0x30] sm:$0xff]  ;;  %v287_v21 = vld [vmem:[%s1048_s4 + $0x28] sm:$0xff]  ;;  %s476_s15 = scalar_lea.sflag [#allocation4], %s1044_s28  ;;  %s937_s24 = smov [#allocation5]  }
  0x33   : > { %689 = vmatpush3.msra.mxu0 %v295_v5  ;;  %724 = vmatpush3.msra.mxu1 %v636_v6  ;;  %v629_v20 = vld [vmem:[%s1048_s4 + $0xb0] sm:$0xff]  ;;  %v628_v22 = vld [vmem:[%s1048_s4 + $0xa8] sm:$0xff]  ;;  %v286_v23 = vld [vmem:[%s1048_s4 + $0x20] sm:$0xff]  ;;  %s854_s5 = sshll.u32 %s937_s24, 4  ;;  %s855_s5 = int_to_ptr.vmem [resolvable:$false] %s854_s5 }
  0x34   : > { %690 = vmatprep.subr.mxu0 %v935_v0  ;;  %725 = vmatprep.subr.mxu1 %v935_v0  ;;  %v627_v24 = vld [vmem:[%s1048_s4 + $0xa0] sm:$0xff]  ;;  %v285_v25 = vld [vmem:[%s1048_s4 + $0x18] sm:$0xff]  ;;  %v284_v27 = vld [vmem:[%s1048_s4 + $0x10] sm:$0xff]  ;;  %s856_s6 = scalar_lea.vmem %s855_s5, 512  ;;  %p857_p3 = scmp.lt.s32.totalorder %s1133_s21, %s855_s5 }
  0x35   : > { %691 = vmatpush3.msra.mxu0 %v294_v7  ;;  %726 = vmatpush3.msra.mxu1 %v635_v8  ;;  %v626_v26 = vld [vmem:[%s1048_s4 + $0x98] sm:$0xff]  ;;  %v625_v28 = vld [vmem:[%s1048_s4 + $0x90] sm:$0xff]  ;;  %v283_v29 = vld [vmem:[%s1048_s4 + $0x8] sm:$0xff] }
  0x36   : > { %692 = vmatprep.subr.mxu0 %v935_v0  ;;  %727 = vmatprep.subr.mxu1 %v935_v0  ;;  %v624_v30 = vld [vmem:[%s1048_s4 + $0x88] sm:$0xff]  ;;  %v282_v31 = vld [vmem:[%s1048_s4] sm:$0xff] }
  0x37   : > { %693 = vmatpush3.msra.mxu0 %v293_v9  ;;  %728 = vmatpush3.msra.mxu1 %v634_v10  ;;  %v623_v32 = vld [vmem:[%s1048_s4 + $0x80] sm:$0xff]  ;;  %v622_v34 = vld [vmem:[%s269_s8 + $0x8] sm:$0xff]  ;;  %s850_s4 = scalar_lea.vmem %s1133_s21, 256 }
  0x38   : > { %694 = vmatprep.subr.mxu0 %v935_v0  ;;  %729 = vmatprep.subr.mxu1 %v935_v0  ;;  %v281_v33 = vld [vmem:[%s269_s8] sm:$0xff]  ;;  %p851_p12 = scmp.ne.s32.totalorder %s1133_s21, %s850_s4  ;;  %p858_p5 = scmp.lt.s32.totalorder %s856_s6, %s850_s4 }
  0x39   : > { %695 = vmatpush3.msra.mxu0 %v292_v11  ;;  %730 = vmatpush3.msra.mxu1 %v633_v12  ;;  %v621_v35 = vld [vmem:[%s278_s18] ss:$0 sm:$0xff]  ;;  %v640_v36 = vld [vmem:[%s278_s18 + $0x1] ss:$0 sm:$0xff] }
  0x3a   : > { %696 = vmatprep.subr.mxu0 %v935_v0  ;;  %731 = vmatprep.subr.mxu1 %v935_v0  ;;  %p852_p0 = pnand %p851_p12, %p1011_p9  ;;  %p859_p6 = por %p858_p5, %p857_p3 }
  0x3b   : > { %697 = vmatpush3.msra.mxu0 %v291_v13  ;;  %732 = vmatpush3.msra.mxu1 %v632_v14 }
  0x3c   : > { %698 = vmatprep.subr.mxu0 %v935_v0  ;;  %733 = vmatprep.subr.mxu1 %v935_v0  ;;  %p853_p1 = pneg %p852_p0 }
  0x3d   : > { %699 = vmatpush3.msra.mxu0 %v290_v15  ;;  %734 = vmatpush3.msra.mxu1 %v631_v16 }
  0x3e   : > { %700 = vmatprep.subr.mxu0 %v935_v0  ;;  %735 = vmatprep.subr.mxu1 %v935_v0  ;;  %p860_p7 = pnand %p859_p6, %p853_p1 }
  0x3f   : > { %701 = vmatpush3.msra.mxu0 %v289_v17  ;;  %736 = vmatpush3.msra.mxu1 %v630_v18 }
  0x40   : > { %702 = vmatprep.subr.mxu0 %v935_v0  ;;  %737 = vmatprep.subr.mxu1 %v935_v0 }
  0x41   : > { %703 = vmatpush3.msra.mxu0 %v288_v19  ;;  %738 = vmatpush3.msra.mxu1 %v629_v20 }
  0x42   : > { %704 = vmatprep.subr.mxu0 %v935_v0  ;;  %739 = vmatprep.subr.mxu1 %v935_v0 }
  0x43   : > { %705 = vmatpush3.msra.mxu0 %v287_v21  ;;  %740 = vmatpush3.msra.mxu1 %v628_v22 }
  0x44   : > { %706 = vmatprep.subr.mxu0 %v935_v0  ;;  %741 = vmatprep.subr.mxu1 %v935_v0 }
  0x45   : > { %707 = vmatpush3.msra.mxu0 %v286_v23  ;;  %742 = vmatpush3.msra.mxu1 %v627_v24 }
  0x46   : > { %708 = vmatprep.subr.mxu0 %v935_v0  ;;  %743 = vmatprep.subr.mxu1 %v935_v0 }
  0x47   : > { %709 = vmatpush3.msra.mxu0 %v285_v25  ;;  %744 = vmatpush3.msra.mxu1 %v626_v26 }
  0x48   : > { %710 = vmatprep.subr.mxu0 %v935_v0  ;;  %745 = vmatprep.subr.mxu1 %v935_v0 }
  0x49   : > { %711 = vmatpush3.msra.mxu0 %v284_v27  ;;  %746 = vmatpush3.msra.mxu1 %v625_v28 }
  0x4a   : > { %712 = vmatprep.subr.mxu0 %v935_v0  ;;  %747 = vmatprep.subr.mxu1 %v935_v0 }
  0x4b   : > { %713 = vmatpush3.msra.mxu0 %v283_v29  ;;  %748 = vmatpush3.msra.mxu1 %v624_v30 }
  0x4c   : > { %714 = vmatprep.subr.mxu0 %v935_v0  ;;  %749 = vmatprep.subr.mxu1 %v935_v0 }
  0x4d   : > { %715 = vmatpush3.msra.mxu0 %v282_v31  ;;  %750 = vmatpush3.msra.mxu1 %v623_v32 }
  0x4e   : > { %717 = vmatmul.mubr.f32.vlgmr.msra.gmra.mxu0 %v281_v33  ;;  %752 = vmatmul.mubr.f32.vlgmr.msra.gmra.mxu1 %v622_v34 }
 0x10e   : > { %v371_v37 = vpop.f32.mrf.mxu0  ;;  %v469_v38 = vpop.f32.mrf.mxu1 }
 0x10f   : > { %v372_v39 = vadd.f32 %v621_v35, %v371_v37  ;;  %v470_v40 = vadd.f32 %v640_v36, %v469_v38 }
 0x110   : > { %v718_v41 = vpop.f32.mrf.mxu0  ;;  %v753_v42 = vpop.f32.mrf.mxu1 }
 0x111   : > { %375 = vst [vmem:[%s261_s19] sm:$0xff] %v372_v39  ;;  %641 = vst [vmem:[%s261_s19 + $0x8] sm:$0xff] %v470_v40 }
 0x112   : > { %863 = shalt.err (!%p860_p7)
}
 0x113   : > { %s864_s7 = scalar_lea.hbm %s1138_s30, 256  ;;  %s868_s10 = scalar_lea.hbm %s1189_s3, 512 }
 0x114   : > { %p865_p10 = scmp.ne.s32.totalorder %s1138_s30, %s864_s7  ;;  %p869_p2 = scmp.lt.s32.totalorder %s1138_s30, %s1189_s3 }
 0x115   : > { %p870_p8 = scmp.lt.s32.totalorder %s868_s10, %s864_s7 }
 0x116   : > { %p866_p4 = pnand %p865_p10, %p1011_p9 }
 0x117   : > { %p871_p12 = por %p870_p8, %p869_p2 }
 0x118   : > { %p867_p13 = pneg %p866_p4 }
 0x11a   : > { %p872_p0 = pnand %p871_p12, %p867_p13 }
 0x11c   : > { %875 = shalt.err (!%p872_p0)
}
 0x11d   : > { %s938_s19 = smov 128   ;;  %s939_s22 = smov 8  }
 0x11e   : > { %756 = dma.vmem_to_hbm [thread:$0]  (%p1011_p9), %s1133_s21, 256, %s1138_s30, %s476_s15, %s938_s19, %s938_s19, %s939_s22  }
 0x11f PF: > { %s506_s23 = sand.u32 1, %s910_s12   ;;  %p1195_p1 = scmp.ge.s32.totalorder %s930_s17, 2 }
 0x120   : > { %s507_s29 = scalar_lea.sflag [#allocation4], %s506_s23 }
 0x121   : > { %p763_p3 = pnand %p1195_p1, %p1018_p11 }
 0x123   : > { %p764_p5 = pneg %p763_p3 }
 0x125   : > { %905 = dma.done.wait (%p764_p5), %s507_s29, 256  }
 0x126   : > { %907 = vsyncadd (%p764_p5), %s507_s29, 4294967040  ;;  %s19_s17 = sadd.s32 1, %s930_s17   ;;  %s1196_s12 = smov %s914_s13 }
 0x127   : > { %p16_p6 = scmp.ge.s32.totalorder %s19_s17, 4   ;;  %s1197_s13 = smov %s918_s14 }
 0x128   : > { %s1198_s14 = smov %s1016_s26  ;;  %s1199_s15 = smov %s926_s16 }
 0x129   : > { %s1200_s16 = smov %s1202_s20  ;;  %18 = sbr.rel (!%p16_p6) target bundleno = 6 (0x6), region = 87 }
 0x12e   :  { %512 = vsyncpa [#allocation3], 1 }
 0x12f   :  { %514 = vsyncpa [#allocation3 + $0x1], 1 }
 0x130   :  { %515 = vsyncpa [#allocation4], 1 }
 0x131   :  { %517 = vsyncpa [#allocation4 + $0x1], 1 }

</bundles_post_ra>
